<compile_context>
chip_gen: v5e
topology: v5e:2x2
jax: 0.10.0
libtpu: 0.0.40
codegen_flags: <defaults>
</compile_context>

<pallas_src>
import functools

import numpy as np
import jax
import jax.numpy as jnp
from jax import lax
from jax.experimental import pallas as pl
from jax.experimental.pallas import tpu as pltpu


# ----------------------------- activations ---------------------------------

def _activation(x, act, alpha, beta):
    """Matches the PyTorch module's activation choices (default 'relu')."""
    if act == "relu":
        return jnp.maximum(x, 0.0)
    if act == "swish":
        return x * jax.nn.sigmoid(x)
    if act == "mish":
        return x * jnp.tanh(jax.nn.softplus(x))
    if act == "TACT":
        a = 0.5 * alpha
        b = 0.5 - a
        c = 0.5 * (1.0 + beta)
        return (a * x + b) * (jnp.tanh(c * x) + 1.0)
    if act == "mTACT":
        a = 0.5 * alpha ** 2
        b = 0.5 - a
        c = 0.5 * (1.0 + beta ** 2)
        return (a * x + b) * (jnp.tanh(c * x) + 1.0)
    raise ValueError(f"unknown activation {act!r}")


# ----------------------------- fused kernel --------------------------------

def _fused_bottleneck_kernel(x_ref, w1_ref, w2_ref, w3_ref,
                             b1_ref, b2_ref, b3_ref,
                             o_ref, *, act, alpha, beta):
    # x_ref : (1, H, W, Cin)   native dtype, full image resident across h axis
    # w1    : (Cin, width)            1x1, BN1 scale folded in (compute dtype)
    # w2    : (3, 3*width, width)     3x3 reshaped (kh, kw*width+i, o), BN2 folded
    # w3    : (width, Cout)           1x1, BN3 scale folded in
    # b*    : (1, C) folded BN biases (f32)
    # o_ref : (1, TH, W, Cout)        output tile (compute/out dtype)
    h = pl.program_id(1)
    nh = pl.num_programs(1)
    _, TH, W, Cout = o_ref.shape
    H = x_ref.shape[1]
    Cin = x_ref.shape[3]
    width = w1_ref.shape[1]
    cdt = w1_ref.dtype                      # MXU operand dtype (bf16 or f32)
    M2 = (TH + 2) * W                       # rows incl. one halo row each side
    TW = TH * W

    row0 = pl.multiple_of(h * TH, TH)
    # Interior rows plus one (clamped) halo row above and below.  The image
    # block is already resident in VMEM, so these are cheap local reads.
    x_top = x_ref[0, pl.ds(jnp.maximum(row0 - 1, 0), 1), :, :]
    x_int = x_ref[0, pl.ds(row0, TH), :, :]
    x_bot = x_ref[0, pl.ds(jnp.minimum(row0 + TH, H - 1), 1), :, :]
    x_halo = jnp.concatenate([x_top, x_int, x_bot], axis=0)   # (TH+2, W, Cin)

    # ---- conv1 (1x1, BN1 scale folded) + bias + act on TH+2 rows -----------
    y1 = jnp.dot(x_halo.reshape(M2, Cin).astype(cdt), w1_ref[...],
                 preferred_element_type=jnp.float32)
    y1 = _activation(y1 + b1_ref[...], act, alpha, beta)       # (M2, width) f32

    # conv2's zero padding applies to y1 (post-BN/act), so halo rows that fall
    # outside the image must be zeroed (act(bn1(conv1(0))) != 0).  Use a
    # select on the flattened row index: first W rows / last W rows.
    i_idx = lax.broadcasted_iota(jnp.int32, (M2, 1), 0)
    keep = jnp.logical_and(jnp.logical_or(i_idx >= W, h > 0),
                           jnp.logical_or(i_idx < (TH + 1) * W, h < nh - 1))
    y1 = jnp.where(keep, y1, 0.0)

    # ---- build the kw-packed im2col patch ONCE for all TH+2 rows -----------
    # Column layout per row: [y1[w-1] | y1[w] | y1[w+1]]  (zeros at the image
    # edge).  The +-1 W-shifts are sublane rotates on the flattened view; the
    # wrap-around rows land exactly in the columns that are zeroed anyway.
    if W % 8 == 0:
        sh_r = pltpu.roll(y1, shift=1, axis=0)        # row i holds y1[i-1]
        sh_l = pltpu.roll(y1, shift=M2 - 1, axis=0)   # row i holds y1[i+1]
        w_idx = i_idx % W
        left = jnp.where(w_idx == 0, 0.0, sh_r)
        right = jnp.where(w_idx == W - 1, 0.0, sh_l)
    else:
        # Fallback for non-sublane-aligned W: slice/concat based shifts.
        y1_3d = y1.reshape(TH + 2, W, width)
        zcol = jnp.zeros((TH + 2, 1, width), jnp.float32)
        left = jnp.concatenate([zcol, y1_3d[:, :W - 1, :]], axis=1).reshape(M2, width)
        right = jnp.concatenate([y1_3d[:, 1:, :], zcol], axis=1).reshape(M2, width)
    patch = jnp.concatenate([left, y1, right], axis=-1).astype(cdt)  # (M2, 3*width)

    # ---- conv2 (3x3, pad=1, stride=1) + bias + act --------------------------
    # kw taps collapsed into the contraction dim: 3 matmuls with K = 3*width.
    # Row block for tap kh is the contiguous slice [kh*W : kh*W + TH*W].
    acc = jnp.dot(patch[0:TW], w2_ref[0], preferred_element_type=jnp.float32)
    acc = acc + jnp.dot(patch[W:W + TW], w2_ref[1],
                        preferred_element_type=jnp.float32)
    acc = acc + jnp.dot(patch[2 * W:2 * W + TW], w2_ref[2],
                        preferred_element_type=jnp.float32)
    y2 = _activation(acc + b2_ref[...], act, alpha, beta)       # (TW, width) f32

    # ---- conv3 (1x1, BN3 scale folded) + bias + identity + act --------------
    y3 = jnp.dot(y2.astype(cdt), w3_ref[...],
                 preferred_element_type=jnp.float32)
    y3 = y3 + b3_ref[...] + x_int.reshape(TW, Cin).astype(jnp.float32)
    out = _activation(y3, act, alpha, beta)
    o_ref[...] = out.reshape(1, TH, W, Cout).astype(o_ref.dtype)


# ------------------------------- wrappers -----------------------------------

def _default_vmem_limit_bytes():
    """Scoped VMEM limit from the actual device capacity (v5e/v6e 128 MiB,
    v7x 64 MiB), with headroom for compiler-internal scratch."""
    cap = 64 * 1024 * 1024
    try:
        info = pltpu.get_tpu_info()
        cap = int(getattr(info, "vmem_capacity_bytes", cap))
    except Exception:
        pass
    return min(int(cap * 0.6), 96 * 1024 * 1024)


def _pick_tile_h(H, W, Cin, width, Cout, x_bytes, out_bytes, limit_bytes):
    """Largest divisor of H that fits the scoped VMEM limit, accounting for
    the double-buffered resident full image, the double-buffered output block
    and the per-step in-register working set."""
    fixed = 2 * H * W * Cin * x_bytes                 # resident image (2 bufs)
    best = 1
    for th in range(1, H + 1):
        if H % th:
            continue
        out_blk = 2 * th * W * Cout * out_bytes       # output block (2 bufs)
        work = ((th + 2) * W * (Cin + 8 * width)      # halo rows: x, y1, patch
                + th * W * (width + 2 * Cout)) * 4    # acc, y3, out (f32 est.)
        if fixed + out_blk + work <= limit_bytes:
            best = th
    return best


def bottleneck_forward_nhwc(x_nhwc, p, *, tile_h=None,
                            compute_dtype=jnp.bfloat16, out_dtype=None,
                            activation="relu", alpha=0.25, beta=0.25,
                            vmem_limit_bytes=None):
    """Fused Bottleneck forward in NHWC (preferred entry point).  Pass x in
    its native dtype (bf16 end-to-end is the fast path); it is cast to the
    MXU dtype inside the kernel."""
    N, H, W, Cin = x_nhwc.shape
    width = p["w1"].shape[1]
    Cout = p["w3"].shape[1]
    assert Cin == Cout, "identity shortcut requires inplanes == planes*expansion"
    # TODO(synk): stride>1 / downsample / groups>1 / dilation>1 (non-default
    # Bottleneck ctor args) are not implemented in this fused kernel.
    if out_dtype is None:
        out_dtype = compute_dtype
    if vmem_limit_bytes is None:
        vmem_limit_bytes = _default_vmem_limit_bytes()
    if tile_h is None:
        tile_h = _pick_tile_h(H, W, Cin, width, Cout,
                              x_bytes=x_nhwc.dtype.itemsize,
                              out_bytes=np.dtype(out_dtype).itemsize,
                              limit_bytes=(vmem_limit_bytes * 3) // 4)
    assert H % tile_h == 0, "tile_h must divide H"
    nh = H // tile_h

    f32 = jnp.float32
    # Fold BN scales into the conv weights (in f32), then cast once to the
    # MXU operand dtype; only the bias adds remain in-kernel.
    w1 = (p["w1"].astype(f32) * p["s1"].reshape(1, width)).astype(compute_dtype)
    w2 = (p["w2_hwio"].astype(f32) * p["s2"].reshape(1, 1, 1, width)
          ).reshape(3, 3 * width, width).astype(compute_dtype)
    w3 = (p["w3"].astype(f32) * p["s3"].reshape(1, Cout)).astype(compute_dtype)
    b1 = p["b1"].reshape(1, width).astype(f32)
    b2 = p["b2"].reshape(1, width).astype(f32)
    b3 = p["b3"].reshape(1, Cout).astype(f32)

    kernel = functools.partial(_fused_bottleneck_kernel,
                               act=activation, alpha=alpha, beta=beta)

    return pl.pallas_call(
        kernel,
        out_shape=jax.ShapeDtypeStruct((N, H, W, Cout), out_dtype),
        grid=(N, nh),
        in_specs=[
            # Full image per batch element; block index constant along h, so
            # the image is fetched once per n and stays resident in VMEM
            # (residual + halo rows come from this block).
            # TODO(synk): for very large H*W*Cin on v7x (64 MiB VMEM), switch
            # to H-tiled x with a manually DMA'd 2-row halo instead.
            pl.BlockSpec((1, H, W, Cin), lambda n, h: (n, 0, 0, 0)),
            pl.BlockSpec((Cin, width), lambda n, h: (0, 0)),
            pl.BlockSpec((3, 3 * width, width), lambda n, h: (0, 0, 0)),
            pl.BlockSpec((width, Cout), lambda n, h: (0, 0)),
            pl.BlockSpec((1, width), lambda n, h: (0, 0)),
            pl.BlockSpec((1, width), lambda n, h: (0, 0)),
            pl.BlockSpec((1, Cout), lambda n, h: (0, 0)),
        ],
        out_specs=pl.BlockSpec((1, tile_h, W, Cout), lambda n, h: (n, h, 0, 0)),
        compiler_params=pltpu.CompilerParams(
            dimension_semantics=("parallel", "parallel"),
            vmem_limit_bytes=vmem_limit_bytes),
    )(x_nhwc, w1, w2, w3, b1, b2, b3)


def bottleneck_forward(x_nchw, p, *, tile_h=None,
                       compute_dtype=jnp.bfloat16, out_dtype=None,
                       activation="relu", alpha=0.25, beta=0.25,
                       vmem_limit_bytes=None):
    """PyTorch-layout (NCHW) convenience wrapper.  When chaining blocks, keep
    the network in NHWC (bf16) and call bottleneck_forward_nhwc to avoid
    per-block transposes done outside the kernel."""
    x = jnp.transpose(x_nchw, (0, 2, 3, 1))
    y = bottleneck_forward_nhwc(x, p, tile_h=tile_h,
                                compute_dtype=compute_dtype,
                                out_dtype=out_dtype, activation=activation,
                                alpha=alpha, beta=beta,
                                vmem_limit_bytes=vmem_limit_bytes)
    return jnp.transpose(y, (0, 3, 1, 2))


# ------------------------- deterministic parameters -------------------------

def make_params(key, inplanes, planes, base_width=64, groups=1, eps=1e-5):
    width = int(planes * (base_width / 64.0)) * groups
    out_ch = planes * 4  # expansion = 4
    ks = jax.random.split(key, 15)

    def bn_fold(kg, kb, km, kv, c):
        gamma = jax.random.uniform(kg, (c,), minval=0.5, maxval=1.5)
        beta = jax.random.uniform(kb, (c,), minval=-0.5, maxval=0.5)
        mean = jax.random.uniform(km, (c,), minval=-0.5, maxval=0.5)
        var = jax.random.uniform(kv, (c,), minval=0.5, maxval=1.5)
        scale = gamma / jnp.sqrt(var + eps)
        bias = beta - mean * scale
        return scale.astype(jnp.float32), bias.astype(jnp.float32)

    w1 = (jax.random.normal(ks[0], (inplanes, width)) * 0.1).astype(jnp.float32)
    w2_hwio = (jax.random.normal(ks[1], (3, 3, width, width)) * 0.1).astype(jnp.float32)
    w3 = (jax.random.normal(ks[2], (width, out_ch)) * 0.1).astype(jnp.float32)
    s1, b1 = bn_fold(ks[3], ks[4], ks[5], ks[6], width)
    s2, b2 = bn_fold(ks[7], ks[8], ks[9], ks[10], width)
    s3, b3 = bn_fold(ks[11], ks[12], ks[13], ks[14], out_ch)
    return dict(w1=w1, w2_hwio=w2_hwio, w3=w3,
                s1=s1, b1=b1, s2=s2, b2=b2, s3=s3, b3=b3)


# ------------------------------ pure-JAX reference ---------------------------

def reference_forward_nhwc(x_nhwc, p, compute_dtype=jnp.bfloat16,
                           activation="relu", alpha=0.25, beta=0.25):
    f32 = jnp.float32
    hi = lax.Precision.HIGHEST
    act = lambda v: _activation(v, activation, alpha, beta)
    width = p["w1"].shape[1]
    Cout = p["w3"].shape[1]
    x = x_nhwc.astype(f32)
    xc = x.astype(compute_dtype).astype(f32)
    w1 = (p["w1"].astype(f32) * p["s1"][None, :]).astype(compute_dtype).astype(f32)
    w2 = (p["w2_hwio"].astype(f32) * p["s2"][None, None, None, :]
          ).astype(compute_dtype).astype(f32)
    w3 = (p["w3"].astype(f32) * p["s3"][None, :]).astype(compute_dtype).astype(f32)
    y = act(jnp.einsum("nhwc,co->nhwo", xc, w1, precision=hi) + p["b1"])
    y = y.astype(compute_dtype).astype(f32)
    y = lax.conv_general_dilated(y, w2, (1, 1), ((1, 1), (1, 1)),
                                 dimension_numbers=("NHWC", "HWIO", "NHWC"),
                                 precision=hi)
    y = act(y + p["b2"])
    y = y.astype(compute_dtype).astype(f32)
    y = jnp.einsum("nhwc,co->nhwo", y, w3, precision=hi) + p["b3"]
    return act(y + x)


def reference_forward(x_nchw, p, compute_dtype=jnp.bfloat16,
                      activation="relu", alpha=0.25, beta=0.25):
    x = jnp.transpose(x_nchw, (0, 2, 3, 1))
    y = reference_forward_nhwc(x, p, compute_dtype, activation, alpha, beta)
    return jnp.transpose(y, (0, 3, 1, 2))


# ----------------------------------- main ------------------------------------

if __name__ == "__main__":
    key = jax.random.PRNGKey(0)
    k_x, k_p = jax.random.split(key)

    N, H, W = 2, 16, 16
    planes = 4
    inplanes = planes * 4          # 16 -> identity shortcut is shape-valid
    x = jax.random.normal(k_x, (N, inplanes, H, W), dtype=jnp.float32)
    params = make_params(k_p, inplanes, planes)

    # f32 operands + f32 output: tight structural/numerical check of the fused
    # kernel (tile_h=4 -> grid (2, 4): exercises top/interior/bottom halo tiles).
    out32 = jax.block_until_ready(
        bottleneck_forward(x, params, tile_h=4, compute_dtype=jnp.float32))
    ref32 = jax.block_until_ready(
        reference_forward(x, params, compute_dtype=jnp.float32))
    assert out32.shape == (N, planes * 4, H, W)
    assert out32.dtype == jnp.float32
    assert jnp.allclose(out32, ref32, rtol=2e-3, atol=2e-3), "f32 mismatch vs reference"

    # bf16 operands + bf16 output (MXU-native, minimal HBM traffic; auto tile_h
    # exercises the VMEM-aware tile picker): looser check.
    out16 = jax.block_until_ready(
        bottleneck_forward(x, params, compute_dtype=jnp.bfloat16))
    ref16 = jax.block_until_ready(
        reference_forward(x, params, compute_dtype=jnp.bfloat16))
    assert out16.dtype == jnp.bfloat16
    assert jnp.allclose(out16.astype(jnp.float32), ref16, rtol=5e-2, atol=5e-2), \
        "bf16 mismatch vs reference"

    print("KERNEL_OK")
</pallas_src>

<mosaic_0001>
module attributes {stable_mosaic.version = 11 : i64} {
  func.func @_fused_bottleneck_kernel(%arg0: i32, %arg1: i32, %arg2: memref<1x16x16x16xf32, #tpu.memory_space<vmem>>, %arg3: memref<16x4xf32, #tpu.memory_space<vmem>>, %arg4: memref<3x12x4xf32, #tpu.memory_space<vmem>>, %arg5: memref<4x16xf32, #tpu.memory_space<vmem>>, %arg6: memref<1x4xf32, #tpu.memory_space<vmem>>, %arg7: memref<1x4xf32, #tpu.memory_space<vmem>>, %arg8: memref<1x16xf32, #tpu.memory_space<vmem>>, %arg9: memref<1x4x16x16xf32, #tpu.memory_space<vmem>>) attributes {dimension_semantics = [#tpu.dimension_semantics<parallel>, #tpu.dimension_semantics<parallel>], iteration_bounds = array<i64: 2, 4>, scalar_prefetch = 0 : i64, scratch_operands = 0 : i64, tpu.core_type = #tpu.core_type<tc>, window_params = [{transform_indices = @transform_0, window_bounds = array<i64: 1, 16, 16, 16>}, {pipeline_mode = #tpu.pipeline_mode<synchronous>, transform_indices = @transform_1, window_bounds = array<i64: 16, 4>}, {pipeline_mode = #tpu.pipeline_mode<synchronous>, transform_indices = @transform_2, window_bounds = array<i64: 3, 12, 4>}, {pipeline_mode = #tpu.pipeline_mode<synchronous>, transform_indices = @transform_3, window_bounds = array<i64: 4, 16>}, {pipeline_mode = #tpu.pipeline_mode<synchronous>, transform_indices = @transform_4, window_bounds = array<i64: 1, 4>}, {pipeline_mode = #tpu.pipeline_mode<synchronous>, transform_indices = @transform_5, window_bounds = array<i64: 1, 4>}, {pipeline_mode = #tpu.pipeline_mode<synchronous>, transform_indices = @transform_6, window_bounds = array<i64: 1, 16>}, {transform_indices = @transform_7, window_bounds = array<i64: 1, 4, 16, 16>}]} {
    %c4_i32 = arith.constant 4 : i32
    %0 = arith.muli %arg1, %c4_i32 : i32
    %1 = tpu.assume_multiple %0, 4 : i32
    %c1_i32 = arith.constant 1 : i32
    %2 = arith.subi %1, %c1_i32 : i32
    %c0_i32 = arith.constant 0 : i32
    %3 = arith.maxsi %2, %c0_i32 : i32
    %c0 = arith.constant 0 : index
    %4 = arith.index_cast %3 : i32 to index
    %c0_0 = arith.constant 0 : index
    %c0_1 = arith.constant 0 : index
    %5 = vector.load %arg2[%c0, %4, %c0_0, %c0_1] : memref<1x16x16x16xf32, #tpu.memory_space<vmem>>, vector<1x1x16x16xf32>
    %6 = vector.shape_cast %5 : vector<1x1x16x16xf32> to vector<1x16x16xf32>
    %c0_2 = arith.constant 0 : index
    %7 = arith.index_cast %1 : i32 to index
    %c0_3 = arith.constant 0 : index
    %c0_4 = arith.constant 0 : index
    %8 = vector.load %arg2[%c0_2, %7, %c0_3, %c0_4] : memref<1x16x16x16xf32, #tpu.memory_space<vmem>>, vector<1x4x16x16xf32>
    %9 = vector.shape_cast %8 : vector<1x4x16x16xf32> to vector<4x16x16xf32>
    %c4_i32_5 = arith.constant 4 : i32
    %10 = arith.addi %1, %c4_i32_5 : i32
    %c15_i32 = arith.constant 15 : i32
    %11 = arith.minsi %10, %c15_i32 : i32
    %c0_6 = arith.constant 0 : index
    %12 = arith.index_cast %11 : i32 to index
    %c0_7 = arith.constant 0 : index
    %c0_8 = arith.constant 0 : index
    %13 = vector.load %arg2[%c0_6, %12, %c0_7, %c0_8] : memref<1x16x16x16xf32, #tpu.memory_space<vmem>>, vector<1x1x16x16xf32>
    %14 = vector.shape_cast %13 : vector<1x1x16x16xf32> to vector<1x16x16xf32>
    %15 = tpu.concatenate %6, %9, %14 in 0 : vector<1x16x16xf32>, vector<4x16x16xf32>, vector<1x16x16xf32> -> vector<6x16x16xf32>
    %16 = vector.shape_cast %15 : vector<6x16x16xf32> to vector<96x16xf32>
    %c0_9 = arith.constant 0 : index
    %c0_10 = arith.constant 0 : index
    %17 = vector.load %arg3[%c0_9, %c0_10] : memref<16x4xf32, #tpu.memory_space<vmem>>, vector<16x4xf32>
    %cst = arith.constant dense<0.000000e+00> : vector<96x4xf32>
    %18 = tpu.matmul %16, %17, %cst {dimension_numbers = #tpu.dot_dimension_numbers<[1], [0], [0], [1], [0, 0, 1, 1], [], []>} : vector<96x16xf32>, vector<16x4xf32>, vector<96x4xf32> -> vector<96x4xf32>
    %c0_11 = arith.constant 0 : index
    %c0_12 = arith.constant 0 : index
    %19 = vector.load %arg6[%c0_11, %c0_12] : memref<1x4xf32, #tpu.memory_space<vmem>>, vector<1x4xf32>
    %20 = vector.broadcast %19 : vector<1x4xf32> to vector<96x4xf32>
    %21 = arith.addf %18, %20 : vector<96x4xf32>
    %cst_13 = arith.constant 0.000000e+00 : f32
    %22 = vector.broadcast %cst_13 : f32 to vector<96x4xf32>
    %23 = arith.maximumf %21, %22 : vector<96x4xf32>
    %24 = tpu.iota {dimensions = array<i32: 0>} : vector<96x1xi32>
    %c16_i32 = arith.constant 16 : i32
    %25 = vector.broadcast %c16_i32 : i32 to vector<96x1xi32>
    %26 = arith.cmpi sge, %24, %25 : vector<96x1xi32>
    %c0_i32_14 = arith.constant 0 : i32
    %27 = arith.cmpi sgt, %arg1, %c0_i32_14 : i32
    %28 = vector.broadcast %27 : i1 to vector<96x1xi1>
    %29 = arith.ori %26, %28 : vector<96x1xi1>
    %c80_i32 = arith.constant 80 : i32
    %30 = vector.broadcast %c80_i32 : i32 to vector<96x1xi32>
    %31 = arith.cmpi slt, %24, %30 : vector<96x1xi32>
    %c3_i32 = arith.constant 3 : i32
    %32 = arith.cmpi slt, %arg1, %c3_i32 : i32
    %33 = vector.broadcast %32 : i1 to vector<96x1xi1>
    %34 = arith.ori %31, %33 : vector<96x1xi1>
    %35 = arith.andi %29, %34 : vector<96x1xi1>
    %cst_15 = arith.constant 0.000000e+00 : f32
    %36 = vector.shape_cast %35 : vector<96x1xi1> to vector<96x1xi1>
    %37 = vector.broadcast %36 : vector<96x1xi1> to vector<96x4xi1>
    %38 = vector.broadcast %cst_15 : f32 to vector<96x4xf32>
    %39 = arith.select %37, %23, %38 : vector<96x4xi1>, vector<96x4xf32>
    %c1_i32_16 = arith.constant 1 : i32
    %40 = tpu.dynamic_rotate %39 by %c1_i32_16 dim 0 : vector<96x4xf32>, i32 -> vector<96x4xf32>
    %c95_i32 = arith.constant 95 : i32
    %41 = tpu.dynamic_rotate %39 by %c95_i32 dim 0 : vector<96x4xf32>, i32 -> vector<96x4xf32>
    %c16_i32_17 = arith.constant 16 : i32
    %c0_i32_18 = arith.constant 0 : i32
    %42 = arith.cmpi eq, %c16_i32_17, %c0_i32_18 : i32
    %c1_i32_19 = arith.constant 1 : i32
    %43 = arith.select %42, %c1_i32_19, %c16_i32_17 : i32
    %44 = vector.broadcast %43 : i32 to vector<96x1xi32>
    %45 = arith.remsi %24, %44 : vector<96x1xi32>
    %c0_i32_20 = arith.constant 0 : i32
    %46 = vector.broadcast %c0_i32_20 : i32 to vector<96x1xi32>
    %47 = arith.cmpi ne, %45, %46 : vector<96x1xi32>
    %c0_i32_21 = arith.constant 0 : i32
    %48 = vector.broadcast %c0_i32_21 : i32 to vector<96x1xi32>
    %49 = arith.cmpi slt, %45, %48 : vector<96x1xi32>
    %c0_i32_22 = arith.constant 0 : i32
    %50 = arith.cmpi slt, %43, %c0_i32_22 : i32
    %51 = vector.broadcast %50 : i1 to vector<96x1xi1>
    %52 = vector.broadcast %51 : vector<96x1xi1> to vector<96x1xi1>
    %53 = arith.xori %49, %52 : vector<96x1xi1>
    %54 = arith.andi %53, %47 : vector<96x1xi1>
    %55 = vector.broadcast %43 : i32 to vector<96x1xi32>
    %56 = arith.addi %45, %55 : vector<96x1xi32>
    %57 = arith.select %54, %56, %45 : vector<96x1xi1>, vector<96x1xi32>
    %c0_i32_23 = arith.constant 0 : i32
    %58 = vector.broadcast %c0_i32_23 : i32 to vector<96x1xi32>
    %59 = arith.cmpi eq, %57, %58 : vector<96x1xi32>
    %cst_24 = arith.constant 0.000000e+00 : f32
    %60 = vector.shape_cast %59 : vector<96x1xi1> to vector<96x1xi1>
    %61 = vector.broadcast %60 : vector<96x1xi1> to vector<96x4xi1>
    %62 = vector.broadcast %cst_24 : f32 to vector<96x4xf32>
    %63 = arith.select %61, %62, %40 : vector<96x4xi1>, vector<96x4xf32>
    %c15_i32_25 = arith.constant 15 : i32
    %64 = vector.broadcast %c15_i32_25 : i32 to vector<96x1xi32>
    %65 = arith.cmpi eq, %57, %64 : vector<96x1xi32>
    %cst_26 = arith.constant 0.000000e+00 : f32
    %66 = vector.shape_cast %65 : vector<96x1xi1> to vector<96x1xi1>
    %67 = vector.broadcast %66 : vector<96x1xi1> to vector<96x4xi1>
    %68 = vector.broadcast %cst_26 : f32 to vector<96x4xf32>
    %69 = arith.select %67, %68, %41 : vector<96x4xi1>, vector<96x4xf32>
    %70 = tpu.concatenate %63, %39, %69 in 1 : vector<96x4xf32>, vector<96x4xf32>, vector<96x4xf32> -> vector<96x12xf32>
    %71 = vector.extract_strided_slice %70 {offsets = [0, 0], sizes = [64, 12], strides = [1, 1]} : vector<96x12xf32> to vector<64x12xf32>
    %c0_27 = arith.constant 0 : index
    %c0_28 = arith.constant 0 : index
    %c0_29 = arith.constant 0 : index
    %72 = vector.load %arg4[%c0_27, %c0_28, %c0_29] : memref<3x12x4xf32, #tpu.memory_space<vmem>>, vector<1x12x4xf32>
    %73 = vector.shape_cast %72 : vector<1x12x4xf32> to vector<12x4xf32>
    %cst_30 = arith.constant dense<0.000000e+00> : vector<64x4xf32>
    %74 = tpu.matmul %71, %73, %cst_30 {dimension_numbers = #tpu.dot_dimension_numbers<[1], [0], [0], [1], [0, 0, 1, 1], [], []>} : vector<64x12xf32>, vector<12x4xf32>, vector<64x4xf32> -> vector<64x4xf32>
    %75 = vector.extract_strided_slice %70 {offsets = [16, 0], sizes = [64, 12], strides = [1, 1]} : vector<96x12xf32> to vector<64x12xf32>
    %c1 = arith.constant 1 : index
    %c0_31 = arith.constant 0 : index
    %c0_32 = arith.constant 0 : index
    %76 = vector.load %arg4[%c1, %c0_31, %c0_32] : memref<3x12x4xf32, #tpu.memory_space<vmem>>, vector<1x12x4xf32>
    %77 = vector.shape_cast %76 : vector<1x12x4xf32> to vector<12x4xf32>
    %cst_33 = arith.constant dense<0.000000e+00> : vector<64x4xf32>
    %78 = tpu.matmul %75, %77, %cst_33 {dimension_numbers = #tpu.dot_dimension_numbers<[1], [0], [0], [1], [0, 0, 1, 1], [], []>} : vector<64x12xf32>, vector<12x4xf32>, vector<64x4xf32> -> vector<64x4xf32>
    %79 = arith.addf %74, %78 : vector<64x4xf32>
    %80 = vector.extract_strided_slice %70 {offsets = [32, 0], sizes = [64, 12], strides = [1, 1]} : vector<96x12xf32> to vector<64x12xf32>
    %c2 = arith.constant 2 : index
    %c0_34 = arith.constant 0 : index
    %c0_35 = arith.constant 0 : index
    %81 = vector.load %arg4[%c2, %c0_34, %c0_35] : memref<3x12x4xf32, #tpu.memory_space<vmem>>, vector<1x12x4xf32>
    %82 = vector.shape_cast %81 : vector<1x12x4xf32> to vector<12x4xf32>
    %cst_36 = arith.constant dense<0.000000e+00> : vector<64x4xf32>
    %83 = tpu.matmul %80, %82, %cst_36 {dimension_numbers = #tpu.dot_dimension_numbers<[1], [0], [0], [1], [0, 0, 1, 1], [], []>} : vector<64x12xf32>, vector<12x4xf32>, vector<64x4xf32> -> vector<64x4xf32>
    %84 = arith.addf %79, %83 : vector<64x4xf32>
    %c0_37 = arith.constant 0 : index
    %c0_38 = arith.constant 0 : index
    %85 = vector.load %arg7[%c0_37, %c0_38] : memref<1x4xf32, #tpu.memory_space<vmem>>, vector<1x4xf32>
    %86 = vector.broadcast %85 : vector<1x4xf32> to vector<64x4xf32>
    %87 = arith.addf %84, %86 : vector<64x4xf32>
    %cst_39 = arith.constant 0.000000e+00 : f32
    %88 = vector.broadcast %cst_39 : f32 to vector<64x4xf32>
    %89 = arith.maximumf %87, %88 : vector<64x4xf32>
    %c0_40 = arith.constant 0 : index
    %c0_41 = arith.constant 0 : index
    %90 = vector.load %arg5[%c0_40, %c0_41] : memref<4x16xf32, #tpu.memory_space<vmem>>, vector<4x16xf32>
    %cst_42 = arith.constant dense<0.000000e+00> : vector<64x16xf32>
    %91 = tpu.matmul %89, %90, %cst_42 {dimension_numbers = #tpu.dot_dimension_numbers<[1], [0], [0], [1], [0, 0, 1, 1], [], []>} : vector<64x4xf32>, vector<4x16xf32>, vector<64x16xf32> -> vector<64x16xf32>
    %c0_43 = arith.constant 0 : index
    %c0_44 = arith.constant 0 : index
    %92 = vector.load %arg8[%c0_43, %c0_44] : memref<1x16xf32, #tpu.memory_space<vmem>>, vector<1x16xf32>
    %93 = vector.broadcast %92 : vector<1x16xf32> to vector<64x16xf32>
    %94 = arith.addf %91, %93 : vector<64x16xf32>
    %95 = vector.shape_cast %9 : vector<4x16x16xf32> to vector<64x16xf32>
    %96 = arith.addf %94, %95 : vector<64x16xf32>
    %cst_45 = arith.constant 0.000000e+00 : f32
    %97 = vector.broadcast %cst_45 : f32 to vector<64x16xf32>
    %98 = arith.maximumf %96, %97 : vector<64x16xf32>
    %99 = vector.shape_cast %98 : vector<64x16xf32> to vector<1x4x16x16xf32>
    %c0_46 = arith.constant 0 : index
    %c0_47 = arith.constant 0 : index
    %c0_48 = arith.constant 0 : index
    %c0_49 = arith.constant 0 : index
    %100 = vector.load %arg9[%c0_46, %c0_47, %c0_48, %c0_49] : memref<1x4x16x16xf32, #tpu.memory_space<vmem>>, vector<1x4x16x16xf32>
    tpu.vector_store %arg9[%c0_46, %c0_47, %c0_48, %c0_49], %99 {strides = array<i32>} : memref<1x4x16x16xf32, #tpu.memory_space<vmem>>, vector<1x4x16x16xf32>,
    return
  }
  func.func @transform_0(%arg0: i32, %arg1: i32) -> (i32, i32, i32, i32) {
    %c0_i32 = arith.constant 0 : i32
    %c0_i32_0 = arith.constant 0 : i32
    %c0_i32_1 = arith.constant 0 : i32
    %c0_i32_2 = arith.constant 0 : i32
    return %arg0, %c0_i32, %c0_i32_0, %c0_i32_1 : i32, i32, i32, i32
  }
  func.func @transform_1(%arg0: i32, %arg1: i32) -> (i32, i32) {
    %c0_i32 = arith.constant 0 : i32
    %c0_i32_0 = arith.constant 0 : i32
    %c0_i32_1 = arith.constant 0 : i32
    return %c0_i32, %c0_i32_0 : i32, i32
  }
  func.func @transform_2(%arg0: i32, %arg1: i32) -> (i32, i32, i32) {
    %c0_i32 = arith.constant 0 : i32
    %c0_i32_0 = arith.constant 0 : i32
    %c0_i32_1 = arith.constant 0 : i32
    %c0_i32_2 = arith.constant 0 : i32
    return %c0_i32, %c0_i32_0, %c0_i32_1 : i32, i32, i32
  }
  func.func @transform_3(%arg0: i32, %arg1: i32) -> (i32, i32) {
    %c0_i32 = arith.constant 0 : i32
    %c0_i32_0 = arith.constant 0 : i32
    %c0_i32_1 = arith.constant 0 : i32
    return %c0_i32, %c0_i32_0 : i32, i32
  }
  func.func @transform_4(%arg0: i32, %arg1: i32) -> (i32, i32) {
    %c0_i32 = arith.constant 0 : i32
    %c0_i32_0 = arith.constant 0 : i32
    %c0_i32_1 = arith.constant 0 : i32
    return %c0_i32, %c0_i32_0 : i32, i32
  }
  func.func @transform_5(%arg0: i32, %arg1: i32) -> (i32, i32) {
    %c0_i32 = arith.constant 0 : i32
    %c0_i32_0 = arith.constant 0 : i32
    %c0_i32_1 = arith.constant 0 : i32
    return %c0_i32, %c0_i32_0 : i32, i32
  }
  func.func @transform_6(%arg0: i32, %arg1: i32) -> (i32, i32) {
    %c0_i32 = arith.constant 0 : i32
    %c0_i32_0 = arith.constant 0 : i32
    %c0_i32_1 = arith.constant 0 : i32
    return %c0_i32, %c0_i32_0 : i32, i32
  }
  func.func @transform_7(%arg0: i32, %arg1: i32) -> (i32, i32, i32, i32) {
    %c0_i32 = arith.constant 0 : i32
    %c0_i32_0 = arith.constant 0 : i32
    %c0_i32_1 = arith.constant 0 : i32
    return %arg0, %arg1, %c0_i32, %c0_i32_0 : i32, i32, i32, i32
  }
}

</mosaic_0001>

<bundles_post_ra>
// kernel: tpu_custom_call.1
= control target key start
LH: loop header
LB: loop body
LE: loop exit
PB: predicated region body
PF: predicated region fallthrough
CT: control target
= control target key end

     0   :  { %s2319_s0 = inlined_call_operand.hbm [shape: f32[2,16,16,16], index: 0, kind: input, shape index: {}]   ;;  %s2320_s1 = inlined_call_operand.vmem [shape: f32[16,4], index: 1, kind: input, shape index: {}]   ;;  %s2321_s2 = inlined_call_operand.vmem [shape: f32[3,12,4], index: 2, kind: input, shape index: {}]   ;;  %s2322_s3 = inlined_call_operand.vmem [shape: f32[4,16], index: 3, kind: input, shape index: {}]   ;;  %s2323_s4 = inlined_call_operand.vmem [shape: f32[1,4], index: 4, kind: input, shape index: {}]   ;;  %s2324_s5 = inlined_call_operand.vmem [shape: f32[1,4], index: 5, kind: input, shape index: {}]   ;;  %s2325_s6 = inlined_call_operand.vmem [shape: f32[1,16], index: 6, kind: input, shape index: {}]   ;;  %s2326_s7 = inlined_call_operand.hbm [shape: f32[2,16,16,16], index: 7, kind: output, shape index: {}]  }
   0x1   :  { %2334 = sst [smem:[#allocation15_spill]] %s2326_s7 }
   0x2   :  { %12 = vsyncpa [#allocation3], 0 }
   0x3   :  { %14 = vsyncpa [#allocation3 + $0x1], 0 }
   0x4   :  { %15 = vsyncpa [#allocation4], 0 }
   0x5   :  { %17 = vsyncpa [#allocation4 + $0x1], 0  ;;  %s1783_s24 = smov 0   ;;  %s1785_s25 = smov 0  }
   0x6   :  { %s1787_s26 = smov 0   ;;  %s1789_s27 = smov 0  }
   0x7   :  { %s1791_s28 = smov 0   ;;  %s1793_s29 = smov 0  }
   0x8   :  { %s1795_s30 = smov 0   ;;  %s1797_s8 = smov 0  }
   0x9   :  { %s1799_s9 = smov 0   ;;  %s1801_s10 = smov 0  }
   0xa   :  { %s1803_s11 = smov 0  }
   0xb LB: > { %2335 = sst [smem:[#allocation8_spill]] %s1728_s9  ;;  %s1391_s12 = sadd.s32 4294967295, %s1736_s11   ;;  %s1736_s11 = sphi %s1803_s11, %s23_s11   ;;  %s1732_s10 = sphi %s1801_s10, %s2355_s10   ;;  %s1728_s9 = sphi %s1799_s9, %s2354_s9   ;;  %s1724_s8 = sphi %s1797_s8, %s2353_s8   ;;  %s1720_s30 = sphi %s1795_s30, %s2352_s30   ;;  %s1716_s29 = sphi %s1793_s29, %s2361_s29   ;;  %s1712_s28 = sphi %s1791_s28, %s2360_s28   ;;  %s1708_s27 = sphi %s1789_s27, %s2359_s27   ;;  %s1704_s26 = sphi %s1787_s26, %s2358_s26   ;;  %s1700_s25 = sphi %s1785_s25, %s2357_s25   ;;  %s1696_s24 = sphi %s1783_s24, %s2356_s24  }
   0xc   : > { %2336 = sst [smem:[#allocation9_spill]] %s1732_s10  ;;  %s1392_s13 = sadd.s32 4294967294, %s1736_s11  }
   0xd   : > { %s32_s14 = sadd.s32 1, %s1728_s9  ;;  %s35_s15 = sadd.s32 1, %s1732_s10 }
   0xe   : > { %p33_p0 = scmp.ge.s32.totalorder %s32_s14, 4  ;;  %s42_s16 = sadd.s32 1, %s1716_s29 }
   0xf   : > { %p49_p1 = scmp.ne.s32.totalorder %s1716_s29, %s1712_s28  ;;  %p50_p2 = scmp.eq.s32.totalorder %s1736_s11, 0 }
  0x10   : > { %s2363_s14 = smov (%p33_p0, %s32_s14), 0  ;;  %s2365_s15 = smov (!%p33_p0, %s35_s15), %s1732_s10 }
  0x11   : > { %2337 = sst [smem:[#allocation10_spill]] %s2363_s14  ;;  %p1847_p3 = por %p50_p2, %p49_p1 }
  0x12   : > { %p55_p4 = scmp.ne.s32.totalorder %s1712_s28, %s1708_s27  ;;  %p37_p5 = scmp.ge.s32.totalorder %s2365_s15, 2 }
  0x13   : > { %p56_p6 = scmp.eq.s32.totalorder %s1391_s12, 0  ;;  %s192_s18 = ssub.s32 %s1728_s9, %s2363_s14 }
  0x14   : > { %s196_s19 = sadd.s32 1, %s1704_s26  ;;  %s2367_s15 = smov (%p37_p5, %s2365_s15), 0 }
  0x15   : > { %2339 = sst [smem:[#allocation11_spill]] %s2367_s15  ;;  %p1857_p7 = por %p56_p6, %p55_p4 }
  0x16   : > { %p206_p8 = scmp.ne.s32.totalorder %s1704_s26, %s1700_s25  ;;  %s39_s21 = ssub.s32 %s1732_s10, %s2367_s15 }
  0x17   : > { %p207_p9 = scmp.eq.s32.totalorder %s1391_s12, 7  ;;  %p40_p10 = scmp.eq.s32.totalorder %s39_s21, 0 }
  0x18   : > { %s193_s22 = sor.u32 %s192_s18, %s39_s21  ;;  %p212_p13 = scmp.ne.s32.totalorder %s1700_s25, %s1696_s24 }
  0x19   : > { %p194_p11 = scmp.eq.s32.totalorder %s193_s22, 0  ;;  %p1865_p12 = por %p207_p9, %p206_p8 }
  0x1a   : > { %s1870_s27 = scalar_select %p40_p10, %s1716_s29, %s42_s16  }
  0x1b   : > { %s2341_s23 = scalar_select %p1865_p12, 1, 0 }
  0x1c   : > { %2343 = sst [smem:[#allocation13_spill]] %s1870_s27  ;;  %p213_p0 = scmp.eq.s32.totalorder %s1392_s13, 7 }
  0x1d   : > { %2342 = sst [smem:[#allocation12_spill]] %s2341_s23  ;;  %p1486_p1 = scmp.lt.s32.totalorder %s1736_s11, 8 }
  0x1e   : > { %s1873_s14 = scalar_select %p194_p11, %s1704_s26, %s196_s19  }
  0x1f   : > { %p1878_p2 = por %p213_p0, %p212_p13  ;;  %s251_s12 = sand.u32 1, %s1716_s29  }
  0x20   : > { %2344 = sst [smem:[#allocation14_spill]] %s1873_s14  ;;  %s1395_s18 = sshll.u32 %s251_s12, 8 }
  0x21   : > { %s1465_s21 = sshll.u32 %s1732_s10, 8  ;;  %s255_s16 = scalar_lea.vmem [#allocation2], %s1395_s18 }
  0x22   : > { %s260_s23 = scalar_lea.hbm %s2319_s0, %s1465_s21  ;;  %s263_s27 = sshll.u32 %s255_s16, 4  ;;  %s264_s27 = int_to_ptr.vmem [resolvable:$true] %s263_s27 }
  0x23   : > { %s261_s7 = sshll.u32 %s260_s23, 4  ;;  %p1479_p4 = pnand %p1486_p1, %p1847_p3  ;;  %s262_s7 = int_to_ptr.hbm [resolvable:$true] %s261_s7 }
  0x24   : > { %p1398_p5 = scmp.ge.s32.totalorder %s1736_s11, 1  ;;  %s252_s13 = scalar_lea.sflag [#allocation3], %s251_s12 }
  0x25   : > { %s1738_s19 = smov 128   ;;  %s1739_s14 = smov 8  }
  0x26   : > { %1481 = dma.hbm_to_vmem [thread:$0]  (!%p1479_p4), %s262_s7, 4096, %s264_s27, %s252_s13, %s1738_s19, %s1738_s19, %s1739_s14  }
  0x27   : > { %p271_p6 = scmp.lt.s32.totalorder %s1736_s11, 9 }
  0x29   : > { %p272_p8 = pnand %p1398_p5, %p271_p6 }
  0x2a   : > { %s277_s10 = sand.u32 (!%p272_p8), 1, %s1712_s28  }
  0x2b   : > { %275 = sbr.rel (%p272_p8) target bundleno = 731 (0x2db), region = 48  ;;  %s1399_s15 = sshll.u32 (!%p272_p8), %s277_s10, 8 }
  0x2c   : > { %s278_s21 = scalar_lea.sflag (!%p272_p8), [#allocation3], %s277_s10  ;;  %s281_s18 = scalar_lea.vmem (!%p272_p8), [#allocation2], %s1399_s15 }
  0x30   : > { %1687 = dma.done.wait (%p1857_p7), %s278_s21, 4096  }
  0x31   : > { %1689 = vsyncadd (%p1857_p7), %s278_s21, 4294963200  ;;  %s1401_s17 = sshll.u32 %s1720_s30, 2  ;;  %v340_v0 = vld [vmem:[%s2320_s1 + $0x8] sm:$0xff]  ;;  %v339_v1 = vld [vmem:[%s2320_s1] sm:$0xff]  ;;  %vm345_vm0 = vcmask 130048   ;;  %s1466_s19 = sshll.u32 %s1720_s30, 6  ;;  %v447_v28 = vlaneseq }
  0x32   : > { %s1402_s23 = sadd.s32 4294967295, %s1401_s17  ;;  %s332_s12 = sadd.s32 4, %s1401_s17  ;;  %396 = vmatpush.msra.mxu0 %v340_v0  ;;  %1468 = vmatpush.msra.mxu3 %v340_v0  ;;  %v1944_v14 = vld [vmem:[%s2323_s4] ss:$0 sm:$0xff]  ;;  %vm1006_vm11 = vcmask 1043456   ;;  %vm963_vm12 = vcmask 64512  }
  0x33   : > { %p316_p3 = scmp.gt.s32.totalorder %s1402_s23, 0  ;;  %p333_p9 = scmp.lt.s32.totalorder %s332_s12, 15  ;;  %v1962_v33 = vshrl.u32 %v447_v28, 7  ;;  %vm950_vm13 = vcmask 31744   ;;  %vm981_vm14 = vcmask 97280  }
  0x34   : > { %397 = vmatpush.msra.mxu0 %v339_v1  ;;  %1469 = vmatpush.msra.mxu3 %v339_v1  ;;  %s323_s15 = scalar_lea.vmem %s281_s18, %s1466_s19 [#allocation2]  ;;  %p472_p7 = scmp.gt.s32.totalorder %s1720_s30, 0 }
  0x35   : > { %s2369_s23 = smov (!%p316_p3, %s1402_s23), 0  ;;  %s2371_s12 = smov (!%p333_p9, %s332_s12), 15  ;;  %v1907_v5 = vld [vmem:[%s323_s15] sm:$0xff]  ;;  %v1911_v6 = vld [vmem:[%s323_s15 + $0x8] sm:$0xff]  ;;  %v1915_v7 = vld [vmem:[%s323_s15 + $0x10] sm:$0xff]  ;;  %v453_v36 = vadd.s32 40, %v1962_v33 }
  0x36   : > { %s1403_s7 = sshll.u32 %s2369_s23, 4  ;;  %s1405_s16 = sshll.u32 %s2371_s12, 4  ;;  %v1919_v8 = vld [vmem:[%s323_s15 + $0x18] sm:$0xff]  ;;  %v1923_v9 = vld [vmem:[%s323_s15 + $0x20] sm:$0xff]  ;;  %v1927_v10 = vld [vmem:[%s323_s15 + $0x28] sm:$0xff]  ;;  %vm576_vm2 = vcmp.lt.s32.totalorder %v1962_v33, 1 }
  0x37   : > { %s319_s20 = scalar_lea.vmem %s281_s18, %s1403_s7 [#allocation2]  ;;  %s336_s13 = scalar_lea.vmem %s281_s18, %s1405_s16 [#allocation2]  ;;  %v1931_v11 = vld [vmem:[%s323_s15 + $0x30] sm:$0xff]  ;;  %v1935_v12 = vld [vmem:[%s323_s15 + $0x38] sm:$0xff]  ;;  %v653_v40 = vand.u32 15, %v453_v36  ;;  %vm601_vm4 = vcmp.lt.s32.totalorder %v1962_v33, 7  ;;  %v455_v53 = vadd.s32 56, %v1962_v33 }
  0x38   : > { %v320_v2 = vld [vmem:[%s319_s20] sm:$0xff]  ;;  %v338_v3 = vld [vmem:[%s336_s13 + $0x8] sm:$0xff]  ;;  %s473_s21 = scalar_select %p472_p7, 1, 0 }
  0x39   : > { %1406 = vmatmul.msk.f32.vlgmr.msra.gmra.mxu0 %vm345_vm0, %v320_v2  ;;  %1417 = vmatmul.msk.f32.vlgmr.msra.gmra.mxu3 %vm345_vm0, %v338_v3  ;;  %v321_v4 = vld [vmem:[%s319_s20 + $0x8] sm:$0xff]  ;;  %v337_v13 = vld [vmem:[%s336_s13] sm:$0xff]  ;;  %s1740_s23 = smov 4   ;;  %vm811_vm3 = vcmp.eq.s32.totalorder %v653_v40, 15  ;;  %s1741_s12 = smov 8   ;;  %v667_v58 = vand.u32 15, %v455_v53 }
  0x3a   : > { %v474_v15 = vstv %s473_s21  ;;  %p500_p10 = scmp.lt.s32.totalorder %s1720_s30, 3  ;;  %s310_s20 = sand.u32 1, %s1700_s25  }
  0x3b   : > { %vm475_vm1 = vcmp.eq.s32.totalorder %v474_v15, 1  ;;  %vm813_vm5 = vcmp.eq.s32.totalorder %v667_v58, 15  ;;  %v457_v15 = vadd.s32 72, %v1962_v33  ;;  %s1400_s16 = sshll.u32 %s310_s20, 6  ;;  %s1467_s19 = sshll.u32 %s1720_s30, 3 }
  0x3c   : > { %s501_s7 = scalar_select %p500_p10, 1, 0 }
  0x3d   : > { %s2238_s13 = scalar_lea.vmem [#allocation5], %s1400_s16  ;;  %s1461_s15 = sshll.u32 %s1724_s8, 5 }
  0x3e   : > { %s1292_s21 = sadd.s32 %s1467_s19, %s1461_s15  ;;  %s1295_s30 = sshll.u32 %s2238_s13, 4  ;;  %s1296_s30 = int_to_ptr.vmem [resolvable:$true] %s1295_s30 }
  0x3f   : > { %s1462_s18 = sshll.u32 %s1292_s21, 3  ;;  %s1280_s10 = scalar_lea.sflag [#allocation4], %s310_s20 }
  0x41   : > { %1407 = vmatmul.msk.f32.gmra.mxu0 %vm345_vm0, %v321_v4 }
  0x49   : > { %1408 = vmatmul.msk.f32.gmra.mxu0 %vm345_vm0, %v1907_v5 }
  0x51   : > { %1409 = vmatmul.msk.f32.gmra.mxu0 %vm345_vm0, %v1911_v6 }
  0x59   : > { %1410 = vmatmul.msk.f32.gmra.mxu0 %vm345_vm0, %v1915_v7 }
  0x61   : > { %1411 = vmatmul.msk.f32.gmra.mxu0 %vm345_vm0, %v1919_v8 }
  0x69   : > { %1412 = vmatmul.msk.f32.gmra.mxu0 %vm345_vm0, %v1923_v9 }
  0x71   : > { %1413 = vmatmul.msk.f32.gmra.mxu0 %vm345_vm0, %v1927_v10 }
  0x79   : > { %1414 = vmatmul.msk.f32.gmra.mxu0 %vm345_vm0, %v1931_v11 }
  0x81   : > { %1415 = vmatmul.msk.f32.gmra.mxu0 %vm345_vm0, %v1935_v12 }
  0x89   : > { %1416 = vmatmul.msk.f32.gmra.mxu0 %vm345_vm0, %v337_v13 }
  0xb6   : > { %v399_v16 = vpop.f32.mrf.mxu0 }
  0xb7   : > { %v400_v17 = vadd.f32 %v1944_v14, %v399_v16 }
  0xb9   : > { %v435_v18 = vmax.f32 %v400_v17, 0.0 }
  0xbb   : > { %v1947_v19 = vsel %vm475_vm1, %v435_v18, 0.0 }
  0xbc   : > { %866 = vrot.lane.b32.xlu1 %v1947_v19, %s1740_s23 }
  0xbe   : > { %v402_v20 = vpop.f32.mrf.mxu0 }
  0xbf   : > { %v403_v21 = vadd.f32 %v1944_v14, %v402_v20 }
  0xc1   : > { %v436_v22 = vmax.f32 %v403_v21, 0.0 }
  0xc3   : > { %v1952_v23 = vsel %vm475_vm1, %v436_v22, 0.0  ;;  %v502_v22 = vstv %s501_s7  ;;  %s2348_s7 = sld [smem:[#allocation15_spill]] }
  0xc4   : > { %vm2018_vm6 = vcmp.eq.s32.totalorder %v502_v22, 1  ;;  %v976_v22 = vld [vmem:[%s2321_s2] sm:$0xff] }
  0xc6   : > { %v1954_v24 = vpop.f32.mrf.mxu0 }
  0xc9   : > { %s1294_s27 = scalar_lea.hbm %s2348_s7, %s1462_s18  ;;  %s1634_s21 = scalar_lea.hbm %s2348_s7, 512 }
  0xca   : > { %s1297_s8 = sshll.u32 %s1294_s27, 4  ;;  %s1298_s8 = int_to_ptr.hbm [resolvable:$true] %s1297_s8 }
  0xcb   : > { %s1628_s22 = sshra.s32 %s1298_s8, 4  ;;  %s1629_s22 = int_to_ptr.hbm [resolvable:$true] %s1628_s22 }
  0xcc   : > { %s1630_s16 = scalar_lea.hbm %s1629_s22, 64  ;;  %p1635_p1 = scmp.lt.s32.totalorder %s1629_s22, %s2348_s7 }
  0xcd   : > { %p1631_p11 = scmp.ne.s32.totalorder %s1629_s22, %s1630_s16  ;;  %p1636_p4 = scmp.lt.s32.totalorder %s1634_s21, %s1630_s16 }
  0xce   : > { %v1956_v25 = vpop.f32.mrf.mxu0 }
  0xcf   : > { %p1632_p13 = pnand %p1631_p11, %p1865_p12  ;;  %p1637_p5 = por %p1636_p4, %p1635_p1 }
  0xd1   : > { %p1633_p0 = pneg %p1632_p13 }
  0xd3   : > { %p1638_p6 = pnand %p1637_p5, %p1633_p0 }
  0xd6   : > { %v411_v26 = vpop.f32.mrf.mxu0 }
  0xd7   : > { %v412_v27 = vadd.f32 %v1944_v14, %v411_v26  ;;  %v681_v26 = vand.u32 15, %v457_v15 }
  0xd9   : > { %v1959_v30 = vmax.f32 %v412_v27, 0.0  ;;  %v409_v27 = vadd.f32 %v1944_v14, %v1956_v25  ;;  %vm815_vm7 = vcmp.eq.s32.totalorder %v681_v26, 15  ;;  %v454_v26 = vadd.s32 48, %v1962_v33 }
  0xdb   : > { %v568_v34 = vrot.slane %v1959_v30, 7  ;;  %v593_v13 = vrot.slane %v1959_v30, 1 }
  0xde   : > { %v414_v29 = vpop.f32.mrf.mxu0 }
  0xdf   : > { %v415_v31 = vadd.f32 %v1944_v14, %v414_v29  ;;  %v1439_v29 = vld [vmem:[%s2321_s2 + $0x28] sm:$0xf] }
  0xe1   : > { %v440_v32 = vmax.f32 %v415_v31, 0.0 }
  0xe3   : > { %v569_v35 = vrot.slane %v440_v32, 7  ;;  %876 = vrot.lane.b32.xlu0 %v440_v32, %s1740_s23  ;;  %v594_v42 = vrot.slane %v440_v32, 1 }
  0xe5   : > { %v1972_v37 = vsel %vm576_vm2, %v568_v34, %v569_v35  ;;  %v608_v20 = vsel %vm601_vm4, %v593_v13, %v594_v42 }
  0xe6   : > { %v417_v38 = vpop.f32.mrf.mxu0 }
  0xe7   : > { %v418_v39 = vadd.f32 %v1944_v14, %v417_v38  ;;  %v2032_v38 = vmax.f32 %v409_v27, 0.0 }
  0xe9   : > { %v441_v41 = vmax.f32 %v418_v39, 0.0  ;;  %v590_v39 = vrot.slane %v1952_v23, 1 }
  0xeb   : > { %v570_v43 = vrot.slane %v441_v41, 7  ;;  %v595_v44 = vrot.slane %v441_v41, 1  ;;  %878 = vrot.lane.b32.xlu1 %v441_v41, %s1740_s23 }
  0xed   : > { %v607_v45 = vsel %vm601_vm4, %v594_v42, %v595_v44  ;;  %v1981_v46 = vsel %vm576_vm2, %v569_v35, %v570_v43  ;;  %v451_v35 = vadd.s32 24, %v1962_v33 }
  0xee   : > { %v420_v47 = vpop.f32.mrf.mxu0  ;;  %v847_v48 = vsel %vm811_vm3, 0.0, %v607_v45  ;;  %v592_v45 = vrot.slane %v2032_v38, 1 }
  0xef   : > { %v421_v49 = vadd.f32 %v1944_v14, %v420_v47  ;;  %924 = vrot.lane.b32.xlu0 %v847_v48, %s1741_s12  ;;  %v432_v48 = vpop.f32.mrf.mxu3 }
  0xf1   : > { %v442_v50 = vmax.f32 %v421_v49, 0.0  ;;  %v406_v49 = vadd.f32 %v1944_v14, %v1954_v24 }
  0xf3   : > { %v571_v51 = vrot.slane %v442_v50, 7  ;;  %v596_v52 = vrot.slane %v442_v50, 1  ;;  %v2056_v53 = vmax.f32 %v406_v49, 0.0 }
  0xf5   : > { %v606_v54 = vsel %vm601_vm4, %v595_v44, %v596_v52  ;;  %v1990_v55 = vsel %vm576_vm2, %v570_v43, %v571_v51  ;;  %v639_v43 = vand.u32 15, %v451_v35  ;;  %v589_v44 = vrot.slane %v1947_v19, 1 }
  0xf6   : > { %v423_v56 = vpop.f32.mrf.mxu0  ;;  %926 = vrot.lane.b32.xlu1 %v606_v54, %s1741_s12  ;;  %v449_v54 = vadd.s32 8, %v1962_v33  ;;  %v591_v24 = vrot.slane %v2056_v53, 1 }
  0xf7   : > { %v424_v57 = vadd.f32 %v1944_v14, %v423_v56  ;;  %880 = vrot.lane.b32.xlu0 %v442_v50, %s1740_s23  ;;  %v612_v47 = vsel %vm601_vm4, %v589_v44, %v590_v39  ;;  %v609_v50 = vsel %vm601_vm4, %v592_v45, %v593_v13  ;;  %vm809_vm8 = vcmp.eq.s32.totalorder %v639_v43, 15  ;;  %v1418_v13 = vld [vmem:[%s2321_s2 + $0x10] sm:$0xff] }
  0xf8   : > { %v610_v58 = vsel %vm601_vm4, %v591_v24, %v592_v45 }
  0xf9   : > { %v443_v59 = vmax.f32 %v424_v57, 0.0  ;;  %v625_v57 = vand.u32 15, %v449_v54  ;;  %v618_v54 = vand.u32 15, %v1962_v33 }
  0xfb   : > { %v572_v60 = vrot.slane %v443_v59, 7  ;;  %v597_v61 = vrot.slane %v443_v59, 1  ;;  %882 = vrot.lane.b32.xlu2 %v443_v59, %s1740_s23  ;;  %v611_v59 = vsel %vm601_vm4, %v590_v39, %v591_v24  ;;  %vm807_vm9 = vcmp.eq.s32.totalorder %v625_v57, 15 }
  0xfc   : > { %v564_v57 = vrot.slane %v1947_v19, 7  ;;  %vm758_vm3 = vcmp.eq.s32.totalorder %v618_v54, 0  ;;  %v565_v19 = vrot.slane %v1952_v23, 7 }
  0xfd   : > { %v605_v62 = vsel %vm601_vm4, %v596_v52, %v597_v61  ;;  %v2000_v63 = vsel %vm576_vm2, %v571_v51, %v572_v60  ;;  %v433_v51 = vadd.f32 %v1944_v14, %v432_v48  ;;  %v845_v52 = vsel %vm809_vm8, 0.0, %v609_v50 }
  0xfe   : > { %v426_v0 = vpop.f32.mrf.mxu0  ;;  %v849_v1 = vsel %vm813_vm5, 0.0, %v605_v62 }
  0xff   : > { %v427_v2 = vadd.f32 %v1944_v14, %v426_v0  ;;  %928 = vrot.lane.b32.xlu1 %v849_v1, %s1741_s12  ;;  %v446_v56 = vmax.f32 %v433_v51, 0.0 }
 0x101   : > { %v444_v3 = vmax.f32 %v427_v2, 0.0 }
 0x103   : > { %v573_v4 = vrot.slane %v444_v3, 7  ;;  %884 = vrot.lane.b32.xlu2 %v444_v3, %s1740_s23  ;;  %v598_v17 = vrot.slane %v444_v3, 1 }
 0x105   : > { %v2010_v16 = vsel %vm576_vm2, %v572_v60, %v573_v4  ;;  %v604_v31 = vsel %vm601_vm4, %v597_v61, %v598_v17  ;;  %v843_v60 = vsel %vm807_vm9, 0.0, %v611_v59  ;;  %v459_v61 = vadd.s32 88, %v1962_v33 }
 0x106   : > { %v429_v18 = vpop.f32.mrf.mxu0 }
 0x107   : > { %v430_v21 = vadd.f32 %v1944_v14, %v429_v18  ;;  %922 = vrot.lane.b32.xlu1 %v608_v20, %s1741_s12  ;;  %v2067_v14 = vsel %vm2018_vm6, %v446_v56, 0.0  ;;  %v695_v0 = vand.u32 15, %v459_v61  ;;  %v456_v20 = vadd.s32 64, %v1962_v33 }
 0x108   : > { %v600_v62 = vrot.slane %v2067_v14, 1 }
 0x109   : > { %v445_v28 = vmax.f32 %v430_v21, 0.0  ;;  %vm817_vm10 = vcmp.eq.s32.totalorder %v695_v0, 15  ;;  %v674_v27 = vand.u32 15, %v456_v20  ;;  %v452_v0 = vadd.s32 32, %v1962_v33 }
 0x10a   : > { %v613_v2 = vsel %vm601_vm4, %v600_v62, %v589_v44 }
 0x10b   : > { %v2026_v32 = vsel %vm2018_vm6, %v445_v28, 0.0  ;;  %930 = vrot.lane.b32.xlu2 %v604_v31, %s1741_s12  ;;  %v853_v3 = vsel %vm817_vm10, 0.0, %v613_v2  ;;  %v660_v31 = vand.u32 15, %v454_v26  ;;  %vm766_vm15 = vcmp.eq.s32.totalorder %v674_v27, 0 }
 0x10c   : > { %v574_v36 = vrot.slane %v2026_v32, 7  ;;  %v599_v25 = vrot.slane %v2026_v32, 1  ;;  %v587_v2 = vsel %vm576_vm2, %v564_v57, %v565_v19  ;;  %v646_v20 = vand.u32 15, %v452_v0 }
 0x10d   : > { %vm764_vm1 = vcmp.eq.s32.totalorder %v660_v31, 0 }
 0x10e   : > { %v603_v40 = vsel %vm601_vm4, %v598_v17, %v599_v25  ;;  %v2041_v41 = vsel %vm576_vm2, %v573_v4, %v574_v36  ;;  %v602_v1 = vsel %vm601_vm4, %v599_v25, %v600_v62  ;;  %v1419_v4 = vld [vmem:[%s2321_s2 + $0x18] sm:$0xf]  ;;  %v977_v17 = vld [vmem:[%s2321_s2 + $0x8] sm:$0xf]  ;;  %vm762_vm4 = vcmp.eq.s32.totalorder %v646_v20, 0 }
 0x10f   : > { %868 = vrot.lane.b32.xlu1 %v1952_v23, %s1740_s23  ;;  %v851_v42 = vsel %vm815_vm7, 0.0, %v603_v40  ;;  %1470 = vmatpush.msk.msra.mxu2 %vm1006_vm11, %v1419_v4  ;;  %v567_v23 = vrot.slane %v2032_v38, 7 }
 0x110   : > { %932 = vrot.lane.b32.xlu0 %v851_v42, %s1741_s12  ;;  %1471 = vmatpush.msk.msrb.mxu3 %vm1006_vm11, %v1419_v4  ;;  %v802_v42 = vsel %vm766_vm15, 0.0, %v2000_v63 }
 0x111   : > { %1420 = vmatpush.msk.msra.mxu1 %vm1006_vm11, %v1419_v4  ;;  %1472 = vmatpush.msra.mxu2 %v1418_v13 }
 0x112   : > { %1473 = vmatpush.msrb.mxu3 %v1418_v13 }
 0x113   : > { %914 = vrot.lane.b32.xlu2 %v612_v47, %s1741_s12  ;;  %1025 = vmatpush.msra.mxu1 %v1418_v13  ;;  %v800_v47 = vsel %vm764_vm1, 0.0, %v1981_v46 }
 0x114   : > { %1429 = vmatpush.msk.msrb.mxu2 %vm1006_vm11, %v977_v17  ;;  %1440 = vmatpush.msk.msra.mxu3 %vm1006_vm11, %v1439_v29 }
 0x116   : > { %1075 = vmatpush.msrb.mxu2 %v976_v22  ;;  %v566_v22 = vrot.slane %v2056_v53, 7 }
 0x117   : > { %920 = vrot.lane.b32.xlu1 %v845_v52, %s1741_s12  ;;  %v575_v52 = vrot.slane %v2067_v14, 7 }
 0x118   : > { %874 = vrot.lane.b32.xlu0 %v1959_v30, %s1740_s23 }
 0x11b   : > { %870 = vrot.lane.b32.xlu2 %v2056_v53, %s1740_s23 }
 0x11f   : > { %888 = vrot.lane.b32.xlu1 %v2067_v14, %s1740_s23 }
 0x120   : > { %918 = vrot.lane.b32.xlu0 %v610_v58, %s1741_s12  ;;  %v588_v58 = vsel %vm576_vm2, %v575_v52, %v564_v57 }
 0x121   : > { %v794_v59 = vsel %vm758_vm3, 0.0, %v588_v58 }
 0x123   : > { %916 = vrot.lane.b32.xlu2 %v843_v60, %s1741_s12 }
 0x128   : > { %872 = vrot.lane.b32.xlu0 %v2032_v38, %s1740_s23  ;;  %v586_v38 = vsel %vm576_vm2, %v565_v19, %v566_v22 }
 0x12b   : > { %886 = vrot.lane.b32.xlu2 %v2026_v32, %s1740_s23 }
 0x12e   : > { %v867_v18 = vpop.permute.xlu1 %866 }
 0x12f   : > { %v951_v61 = vsel %vm950_vm13, %v794_v59, %v867_v18 }
 0x130   : > { %934 = vrot.lane.b32.xlu0 %v602_v1, %s1741_s12 }
 0x133   : > { %936 = vrot.lane.b32.xlu2 %v853_v3, %s1741_s12 }
 0x155   : > { %v883_v15 = vpop.permute.xlu2 %882  ;;  %v877_v21 = vpop.permute.xlu0 %876 }
 0x156   : > { %v956_v25 = vsel %vm950_vm13, %v1972_v37, %v877_v21  ;;  %v959_v43 = vsel %vm950_vm13, %v802_v42, %v883_v15  ;;  %v1438_v37 = vld [vmem:[%s2321_s2 + $0x20] sm:$0xff]  ;;  %v450_v21 = vadd.s32 16, %v1962_v33 }
 0x157   : > { %1128 = vmatpush.msra.mxu3 %v1438_v37  ;;  %v458_v37 = vadd.s32 80, %v1962_v33 }
 0x158   : > { %v632_v26 = vand.u32 15, %v450_v21 }
 0x15a   : > { %vm760_vm5 = vcmp.eq.s32.totalorder %v632_v26, 0 }
 0x15d   : > { %v885_v28 = vpop.permute.xlu2 %884  ;;  %v879_v35 = vpop.permute.xlu1 %878 }
 0x15e   : > { %v957_v48 = vsel %vm950_vm13, %v800_v47, %v879_v35  ;;  %v960_v3 = vsel %vm950_vm13, %v2010_v16, %v885_v28  ;;  %v584_v16 = vsel %vm576_vm2, %v567_v23, %v568_v34  ;;  %v796_v35 = vsel %vm760_vm5, 0.0, %v586_v38 }
 0x15f   : > { %v798_v28 = vsel %vm762_vm4, 0.0, %v584_v16  ;;  %v688_v47 = vand.u32 15, %v458_v37 }
 0x161   : > { %v925_v39 = vpop.permute.xlu0 %924  ;;  %vm768_vm6 = vcmp.eq.s32.totalorder %v688_v47, 0 }
 0x162   : > { %v2114_v40 = vsel %vm963_vm12, %v956_v25, %v925_v39  ;;  %v585_v39 = vsel %vm576_vm2, %v566_v22, %v567_v23 }
 0x163   : > { %1424 = vmatmul.msk.f32.vlgmr.msra.gmra.mxu2 %vm981_vm14, %v2114_v40 }
 0x165   : > { %v931_v44 = vpop.permute.xlu2 %930 }
 0x166   : > { %v2121_v45 = vsel %vm963_vm12, %v959_v43, %v931_v44 }
 0x167   : > { %1427 = vmatmul.msk.f32.vlgmr.msrb.gmra.mxu3 %vm981_vm14, %v2121_v45 }
 0x168   : > { %v927_v49 = vpop.permute.xlu1 %926 }
 0x169   : > { %v2131_v63 = vsel %vm963_vm12, %v957_v48, %v927_v49  ;;  %v881_v50 = vpop.permute.xlu0 %880 }
 0x16a   : > { %v958_v46 = vsel %vm950_vm13, %v1990_v55, %v881_v50  ;;  %v804_v50 = vsel %vm768_vm6, 0.0, %v2041_v41 }
 0x16b   : > { %1425 = vmatmul.msk.f32.gmra.mxu2 %vm981_vm14, %v2131_v63 }
 0x16d   : > { %v915_v51 = vpop.permute.xlu2 %914 }
 0x16e   : > { %v964_v62 = vsel %vm963_vm12, %v951_v61, %v915_v51  ;;  %v1582_v61 = vld [vmem:[%s2324_s5] ss:$0 sm:$0xff] }
 0x171   : > { %v929_v56 = vpop.permute.xlu1 %928 }
 0x172   : > { %v2140_v24 = vsel %vm963_vm12, %v958_v46, %v929_v56  ;;  %v1182_v56 = vld [vmem:[%s2322_s3] sm:$0xf] }
 0x173   : > { %1426 = vmatmul.msk.f32.gmra.mxu2 %vm981_vm14, %v2140_v24  ;;  %1449 = vmatpush.msk.msrb.mxu1 %vm1006_vm11, %v1182_v56 }
 0x175   : > { %v871_v60 = vpop.permute.xlu2 %870 }
 0x176   : > { %v953_v30 = vsel %vm950_vm13, %v796_v35, %v871_v60 }
 0x179   : > { %v923_v55 = vpop.permute.xlu1 %922 }
 0x17b   : > { %1430 = vmatmul.msk.f32.vlgmr.msrb.gmra.mxu2 %vm981_vm14, %v964_v62 }
 0x17d   : > { %v917_v4 = vpop.permute.xlu2 %916 }
 0x181   : > { %v869_v1 = vpop.permute.xlu1 %868 }
 0x182   : > { %v952_v13 = vsel %vm950_vm13, %v587_v2, %v869_v1  ;;  %v933_v15 = vpop.permute.xlu0 %932 }
 0x183   : > { %v973_v17 = vsel %vm963_vm12, %v960_v3, %v933_v15  ;;  %v965_v18 = vsel %vm963_vm12, %v952_v13, %v917_v4 }
 0x184   : > { %1428 = vmatmul.msk.f32.gmra.mxu3 %vm981_vm14, %v973_v17  ;;  %1431 = vmatmul.msk.f32.gmra.mxu2 %vm981_vm14, %v965_v18 }
 0x185   : > { %v887_v48 = vpop.permute.xlu2 %886 }
 0x186   : > { %v961_v51 = vsel %vm950_vm13, %v804_v50, %v887_v48 }
 0x189   : > { %v921_v42 = vpop.permute.xlu1 %920 }
 0x18a   : > { %v875_v27 = vpop.permute.xlu0 %874 }
 0x18b   : > { %v955_v29 = vsel %vm950_vm13, %v798_v28, %v875_v27 }
 0x18c   : > { %v968_v31 = vsel %vm963_vm12, %v955_v29, %v923_v55 }
 0x18d   : > { %1441 = vmatmul.msk.f32.vlgmr.msra.gmra.mxu3 %vm981_vm14, %v968_v31  ;;  %v937_v41 = vpop.permute.xlu2 %936 }
 0x192   : > { %v919_v25 = vpop.permute.xlu0 %918 }
 0x193   : > { %v966_v34 = vsel %vm963_vm12, %v953_v30, %v919_v25 }
 0x194   : > { %1421 = vmatmul.msk.f32.vlgmr.msra.gmra.mxu1 %vm981_vm14, %v966_v34  ;;  %1432 = vmatmul.msk.f32.gmra.mxu2 %vm981_vm14, %v966_v34 }
 0x195   : > { %1442 = vmatmul.msk.f32.gmra.mxu3 %vm981_vm14, %v2114_v40 }
 0x19a   : > { %v873_v53 = vpop.permute.xlu0 %872 }
 0x19b   : > { %v954_v43 = vsel %vm950_vm13, %v585_v39, %v873_v53 }
 0x19c   : > { %v967_v44 = vsel %vm963_vm12, %v954_v43, %v921_v42 }
 0x19d   : > { %1422 = vmatmul.msk.f32.gmra.mxu1 %vm981_vm14, %v967_v44  ;;  %1433 = vmatmul.msk.f32.gmra.mxu2 %vm981_vm14, %v967_v44 }
 0x19e   : > { %1443 = vmatmul.msk.f32.gmra.mxu3 %vm981_vm14, %v2131_v63 }
 0x1a2   : > { %v935_v49 = vpop.permute.xlu0 %934 }
 0x1a5   : > { %1423 = vmatmul.msk.f32.gmra.mxu1 %vm981_vm14, %v968_v31  ;;  %1434 = vmatmul.msk.f32.gmra.mxu2 %vm981_vm14, %v968_v31 }
 0x1a6   : > { %1444 = vmatmul.msk.f32.gmra.mxu3 %vm981_vm14, %v2140_v24 }
 0x1ad   : > { %1435 = vmatmul.msk.f32.gmra.mxu2 %vm981_vm14, %v2114_v40  ;;  %v974_v40 = vsel %vm963_vm12, %v961_v51, %v935_v49 }
 0x1ae   : > { %1445 = vmatmul.msk.f32.gmra.mxu3 %vm981_vm14, %v2121_v45  ;;  %v889_v45 = vpop.permute.xlu1 %888 }
 0x1b5   : > { %1436 = vmatmul.msk.f32.gmra.mxu2 %vm981_vm14, %v2131_v63  ;;  %v577_v63 = vsel %vm576_vm2, %v574_v36, %v575_v52 }
 0x1b6   : > { %1446 = vmatmul.msk.f32.gmra.mxu3 %vm981_vm14, %v973_v17  ;;  %v962_v54 = vsel %vm950_vm13, %v577_v63, %v889_v45 }
 0x1b7   : > { %v975_v46 = vsel %vm963_vm12, %v962_v54, %v937_v41 }
 0x1bd   : > { %1437 = vmatmul.msk.f32.gmra.mxu2 %vm981_vm14, %v2140_v24 }
 0x1be   : > { %1447 = vmatmul.msk.f32.gmra.mxu3 %vm981_vm14, %v974_v40 }
 0x1c6   : > { %1448 = vmatmul.msk.f32.gmra.mxu3 %vm981_vm14, %v975_v46 }
 0x1e6   : > { %v1036_v24 = vpop.f32.mrf.mxu2 }
 0x1ea   : > { %v1045_v32 = vpop.f32.mrf.mxu3 }
 0x1ee   : > { %v1039_v14 = vpop.f32.mrf.mxu2 }
 0x1f6   : > { %v1042_v57 = vpop.f32.mrf.mxu2 }
 0x1fe   : > { %v1077_v58 = vpop.f32.mrf.mxu2 }
 0x207   : > { %v1048_v33 = vpop.f32.mrf.mxu3  ;;  %v1080_v36 = vpop.f32.mrf.mxu2 }
 0x210   : > { %v1130_v52 = vpop.f32.mrf.mxu3 }
 0x211   : > { %v1027_v59 = vpop.f32.mrf.mxu1 }
 0x212   : > { %v1078_v60 = vadd.f32 %v1077_v58, %v1027_v59 }
 0x214   : > { %v1154_v55 = vadd.f32 %v1130_v52, %v1078_v60 }
 0x216   : > { %v1166_v62 = vadd.f32 %v1582_v61, %v1154_v55 }
 0x217   : > { %v1083_v19 = vpop.f32.mrf.mxu2 }
 0x218   : > { %v1174_v0 = vmax.f32 %v1166_v62, 0.0  ;;  %v1133_v1 = vpop.f32.mrf.mxu3 }
 0x21a   : > { %v1030_v2 = vpop.f32.mrf.mxu1  ;;  %1450 = vmatmul.msk.f32.vlgmr.msrb.gmra.mxu1 %vm950_vm13, %v1174_v0 }
 0x21b   : > { %v1081_v3 = vadd.f32 %v1080_v36, %v1030_v2 }
 0x21d   : > { %v1155_v4 = vadd.f32 %v1133_v1, %v1081_v3 }
 0x21f   : > { %v1167_v13 = vadd.f32 %v1582_v61, %v1155_v4 }
 0x220   : > { %v1086_v15 = vpop.f32.mrf.mxu2 }
 0x221   : > { %v1136_v17 = vpop.f32.mrf.mxu3  ;;  %v1175_v18 = vmax.f32 %v1167_v13, 0.0  ;;  %v1087_v22 = vadd.f32 %v1086_v15, %v1036_v24 }
 0x222   : > { %v1033_v20 = vpop.f32.mrf.mxu1 }
 0x223   : > { %v1084_v23 = vadd.f32 %v1083_v19, %v1033_v20  ;;  %1451 = vmatmul.msk.f32.gmra.mxu1 %vm950_vm13, %v1175_v18 }
 0x225   : > { %v1156_v21 = vadd.f32 %v1136_v17, %v1084_v23 }
 0x227   : > { %v1168_v16 = vadd.f32 %v1582_v61, %v1156_v21 }
 0x228   : > { %v1089_v26 = vpop.f32.mrf.mxu2 }
 0x229   : > { %v1139_v27 = vpop.f32.mrf.mxu3  ;;  %v1176_v28 = vmax.f32 %v1168_v16, 0.0  ;;  %v1090_v38 = vadd.f32 %v1089_v26, %v1039_v14  ;;  %v1583_v14 = vld [vmem:[%s2325_s6] ss:$0 sm:$0xff] }
 0x22a   : > { %v1157_v29 = vadd.f32 %v1139_v27, %v1087_v22 }
 0x22b   : > { %1452 = vmatmul.msk.f32.gmra.mxu1 %vm950_vm13, %v1176_v28 }
 0x22c   : > { %v1169_v31 = vadd.f32 %v1582_v61, %v1157_v29 }
 0x22e   : > { %v1177_v35 = vmax.f32 %v1169_v31, 0.0 }
 0x230   : > { %v1092_v30 = vpop.f32.mrf.mxu2 }
 0x231   : > { %v1142_v25 = vpop.f32.mrf.mxu3  ;;  %v1093_v39 = vadd.f32 %v1092_v30, %v1042_v57 }
 0x232   : > { %v1158_v34 = vadd.f32 %v1142_v25, %v1090_v38 }
 0x233   : > { %1453 = vmatmul.msk.f32.gmra.mxu1 %vm950_vm13, %v1177_v35 }
 0x234   : > { %v1170_v53 = vadd.f32 %v1582_v61, %v1158_v34 }
 0x236   : > { %v1178_v42 = vmax.f32 %v1170_v53, 0.0 }
 0x238   : > { %v1095_v37 = vpop.f32.mrf.mxu2 }
 0x239   : > { %v1145_v43 = vpop.f32.mrf.mxu3  ;;  %v1096_v48 = vadd.f32 %v1095_v37, %v1045_v32 }
 0x23a   : > { %v1159_v44 = vadd.f32 %v1145_v43, %v1093_v39 }
 0x23b   : > { %1454 = vmatmul.msk.f32.gmra.mxu1 %vm950_vm13, %v1178_v42 }
 0x23c   : > { %v1171_v47 = vadd.f32 %v1582_v61, %v1159_v44 }
 0x23e   : > { %v1179_v49 = vmax.f32 %v1171_v47, 0.0 }
 0x240   : > { %v1098_v40 = vpop.f32.mrf.mxu2 }
 0x241   : > { %v1148_v50 = vpop.f32.mrf.mxu3  ;;  %v1099_v63 = vadd.f32 %v1098_v40, %v1048_v33 }
 0x242   : > { %v1160_v51 = vadd.f32 %v1148_v50, %v1096_v48 }
 0x243   : > { %1455 = vmatmul.msk.f32.gmra.mxu1 %vm950_vm13, %v1179_v49 }
 0x244   : > { %v1172_v45 = vadd.f32 %v1582_v61, %v1160_v51 }
 0x246   : > { %v1180_v54 = vmax.f32 %v1172_v45, 0.0 }
 0x249   : > { %v1151_v41 = vpop.f32.mrf.mxu3 }
 0x24a   : > { %v1161_v46 = vadd.f32 %v1151_v41, %v1099_v63 }
 0x24b   : > { %1456 = vmatmul.msk.f32.gmra.mxu1 %vm950_vm13, %v1180_v54 }
 0x24c   : > { %v1173_v56 = vadd.f32 %v1582_v61, %v1161_v46 }
 0x24e   : > { %v1181_v24 = vmax.f32 %v1173_v56, 0.0 }
 0x253   : > { %1457 = vmatmul.msk.f32.gmra.mxu1 %vm950_vm13, %v1181_v24 }
 0x297   : > { %v1231_v57 = vpop.f32.mrf.mxu1 }
 0x298   : > { %v1232_v32 = vadd.f32 %v1583_v14, %v1231_v57 }
 0x29a   : > { %v1255_v58 = vadd.f32 %v1232_v32, %v1907_v5 }
 0x29c   : > { %v1263_v33 = vmax.f32 %v1255_v58, 0.0 }
 0x29e   : > { %1271 = vst.msk [vmem:[%s2238_s13] sm:$0xff] %vm345_vm0, %v1263_v33 }
 0x2a0   : > { %v1234_v36 = vpop.f32.mrf.mxu1 }
 0x2a1   : > { %v1235_v52 = vadd.f32 %v1583_v14, %v1234_v36 }
 0x2a3   : > { %v1256_v59 = vadd.f32 %v1235_v52, %v1911_v6 }
 0x2a5   : > { %v1264_v60 = vmax.f32 %v1256_v59, 0.0 }
 0x2a7   : > { %1272 = vst.msk [vmem:[%s2238_s13 + $0x8] sm:$0xff] %vm345_vm0, %v1264_v60 }
 0x2a8   : > { %v1237_v61 = vpop.f32.mrf.mxu1 }
 0x2a9   : > { %v1238_v55 = vadd.f32 %v1583_v14, %v1237_v61 }
 0x2ab   : > { %v1257_v5 = vadd.f32 %v1238_v55, %v1915_v7 }
 0x2ad   : > { %v1265_v62 = vmax.f32 %v1257_v5, 0.0 }
 0x2af   : > { %1273 = vst.msk [vmem:[%s2238_s13 + $0x10] sm:$0xff] %vm345_vm0, %v1265_v62 }
 0x2b0   : > { %v1240_v19 = vpop.f32.mrf.mxu1 }
 0x2b1   : > { %v1241_v0 = vadd.f32 %v1583_v14, %v1240_v19 }
 0x2b3   : > { %v1258_v1 = vadd.f32 %v1241_v0, %v1919_v8 }
 0x2b5   : > { %v1266_v2 = vmax.f32 %v1258_v1, 0.0 }
 0x2b7   : > { %1274 = vst.msk [vmem:[%s2238_s13 + $0x18] sm:$0xff] %vm345_vm0, %v1266_v2 }
 0x2b8   : > { %v1243_v6 = vpop.f32.mrf.mxu1 }
 0x2b9   : > { %v1244_v3 = vadd.f32 %v1583_v14, %v1243_v6 }
 0x2bb   : > { %v1259_v4 = vadd.f32 %v1244_v3, %v1923_v9 }
 0x2bd   : > { %v1267_v13 = vmax.f32 %v1259_v4, 0.0 }
 0x2bf   : > { %1275 = vst.msk [vmem:[%s2238_s13 + $0x20] sm:$0xff] %vm345_vm0, %v1267_v13 }
 0x2c0   : > { %v1246_v7 = vpop.f32.mrf.mxu1 }
 0x2c1   : > { %v1247_v15 = vadd.f32 %v1583_v14, %v1246_v7 }
 0x2c3   : > { %v1260_v17 = vadd.f32 %v1247_v15, %v1927_v10 }
 0x2c5   : > { %v1268_v18 = vmax.f32 %v1260_v17, 0.0 }
 0x2c7   : > { %1276 = vst.msk [vmem:[%s2238_s13 + $0x28] sm:$0xff] %vm345_vm0, %v1268_v18 }
 0x2c8   : > { %v1249_v8 = vpop.f32.mrf.mxu1 }
 0x2c9   : > { %v1250_v20 = vadd.f32 %v1583_v14, %v1249_v8 }
 0x2cb   : > { %v1261_v9 = vadd.f32 %v1250_v20, %v1931_v11 }
 0x2cd   : > { %v1269_v23 = vmax.f32 %v1261_v9, 0.0 }
 0x2cf   : > { %1277 = vst.msk [vmem:[%s2238_s13 + $0x30] sm:$0xff] %vm345_vm0, %v1269_v23 }
 0x2d0   : > { %v1252_v10 = vpop.f32.mrf.mxu1 }
 0x2d1   : > { %v1253_v21 = vadd.f32 %v1583_v14, %v1252_v10 }
 0x2d3   : > { %v1262_v16 = vadd.f32 %v1253_v21, %v1935_v12 }
 0x2d5   : > { %v1270_v22 = vmax.f32 %v1262_v16, 0.0 }
 0x2d7   : > { %1278 = vst.msk [vmem:[%s2238_s13 + $0x38] sm:$0xff] %vm345_vm0, %v1270_v22 }
 0x2d8   : > { %1641 = shalt.err (!%p1638_p6)
}
 0x2d9   : > { %s1742_s20 = smov 128  }
 0x2da   : > { %1476 = dma.vmem_to_hbm [thread:$0]  (%p1865_p12), %s1296_s30, 1024, %s1298_s8, %s1280_s10, %s1742_s20, %s1742_s20, %s1741_s12  }
 0x2db PF: > { %p1487_p8 = scmp.ge.s32.totalorder %s1736_s11, 2  ;;  %s1312_s13 = sand.u32 1, %s1696_s24  }
 0x2dc   : > { %s1313_s23 = scalar_lea.sflag [#allocation4], %s1312_s13 }
 0x2dd   : > { %p1483_p3 = pnand %p1487_p8, %p1878_p2 }
 0x2df   : > { %p1484_p9 = pneg %p1483_p3 }
 0x2e1   : > { %1691 = dma.done.wait (%p1484_p9), %s1313_s23, 1024  }
 0x2e2   : > { %1693 = vsyncadd (%p1484_p9), %s1313_s23, 4294966272  ;;  %s23_s11 = sadd.s32 1, %s1736_s11   ;;  %s2350_s14 = sld [smem:[#allocation14_spill]] }
 0x2e3   : > { %p20_p7 = scmp.ge.s32.totalorder %s23_s11, 10   ;;  %s2351_s12 = sld [smem:[#allocation13_spill]] }
 0x2e4   : > { %s2352_s30 = sld [smem:[#allocation8_spill]]  ;;  %s2356_s24 = smov %s1700_s25 }
 0x2e5   : > { %s2353_s8 = sld [smem:[#allocation9_spill]]  ;;  %s2357_s25 = smov %s1704_s26 }
 0x2e6   : > { %s2354_s9 = sld [smem:[#allocation10_spill]]  ;;  %s2359_s27 = smov %s1712_s28 }
 0x2e7   : > { %s2355_s10 = sld [smem:[#allocation11_spill]]  ;;  %s2360_s28 = smov %s1716_s29 }
 0x2e8   : > { %s2358_s26 = smov %s2350_s14  ;;  %22 = sbr.rel (!%p20_p7) target bundleno = 11 (0xb), region = 98 }
 0x2e9   : > { %s2361_s29 = smov %s2351_s12 }
 0x2ed   :  { %1319 = vsyncpa [#allocation3], 1 }
 0x2ee   :  { %1321 = vsyncpa [#allocation3 + $0x1], 1 }
 0x2ef   :  { %1322 = vsyncpa [#allocation4], 1 }
 0x2f0   :  { %1324 = vsyncpa [#allocation4 + $0x1], 1 }

</bundles_post_ra>
